<compile_context>
chip_gen: v6e
topology: v6e:2x2x1
jax: 0.10.0
libtpu: 0.0.40
codegen_flags: <defaults>
</compile_context>

<pallas_src>
import math
from functools import partial

import numpy as np
import jax
import jax.numpy as jnp
from jax.experimental import pallas as pl
from jax.experimental.pallas import tpu as pltpu

_EPS = 1e-5                       # nn.LayerNorm default eps
_HP = jax.lax.Precision.HIGHEST


# ----------------------------------------------------------------------------
# Pallas kernel: encoder + (folded dynamics) + lane-dense all-steps decoder
# ----------------------------------------------------------------------------
def _kae_kernel(x_ref, w1e_ref, wenc_ref, adec_ref, wdec_ref, vec_ref, out_ref):
    H = w1e_ref.shape[1]           # hidden width (16 * alpha)
    bdim = adec_ref.shape[0]       # latent dim b
    SH = adec_ref.shape[1]         # (steps+1) * H
    SMN = out_ref.shape[1]         # (steps+1) * m * n

    def vrow(r, w):                # one packed vector parameter, shape (1, w)
        return vec_ref[r:r + 1, :w]

    def mm(a, b):
        return jnp.dot(a, b, preferred_element_type=jnp.float32)

    def ln(h, g, beta):            # standard LayerNorm (encoder path)
        mu = jnp.mean(h, axis=-1, keepdims=True)
        var = jnp.mean(jnp.square(h - mu), axis=-1, keepdims=True)
        return (h - mu) * jax.lax.rsqrt(var + _EPS) * g + beta

    # Packed encoder mid weights: [W2e_T | W3e_T] along columns.
    w2e = wenc_ref[:, 0:H]
    w3e = wenc_ref[:, H:H + bdim]
    # Packed decoder weights: [blockdiag(W2d_T@C) | blockdiag(J/H) | blockdiag(W3d_T)].
    bd2 = wdec_ref[:, 0:SH]
    meanm = wdec_ref[:, SH:2 * SH]
    bd3 = wdec_ref[:, 2 * SH:2 * SH + SMN]

    # ----- encoder -----
    x = x_ref[...]                                                    # (bb, m*n)
    h = jnp.tanh(ln(mm(x, w1e_ref[...]) + vrow(0, H), vrow(1, H), vrow(2, H)))
    h = jnp.tanh(ln(mm(h, w2e) + vrow(3, H), vrow(4, H), vrow(5, H)))
    z = mm(h, w3e) + vrow(6, bdim)                                    # (bb, b)

    # ----- decoder: all S1 steps at once, lane-dense (no concat / reshape) --
    # adec columns [s*H:(s+1)*H] hold (Wdyn_T)^(s+1) @ W1d_T @ C (mean-centered),
    # last block W1d_T @ C, so qc is already the LN1-centered pre-activation.
    qc = mm(z, adec_ref[...]) + vrow(7, SH)                           # (bb, SH)
    inv1 = jax.lax.rsqrt(mm(qc * qc, meanm) + _EPS)                   # per-block var
    d = jnp.tanh(qc * inv1 * vrow(8, SH) + vrow(9, SH))
    dc = mm(d, bd2) + vrow(10, SH)                                    # LN2-centered
    inv2 = jax.lax.rsqrt(mm(dc * dc, meanm) + _EPS)
    d2 = jnp.tanh(dc * inv2 * vrow(11, SH) + vrow(12, SH))
    # single lane-dense slab store: out[b, s*mn + j] = decoder(q_s)[b, j]
    out_ref[...] = (mm(d2, bd3) + vrow(13, SMN)).astype(out_ref.dtype)


# ----------------------------------------------------------------------------
# Parameter init (mirrors the PyTorch __init__ shapes / schemes)
# ----------------------------------------------------------------------------
def init_params(key, m, n, b, alpha=1, init_scale=1.0):
    H = 16 * alpha
    N = m * n
    ks = jax.random.split(key, 7)

    def xavier(k, fan_out, fan_in):
        std = math.sqrt(2.0 / (fan_in + fan_out))
        return jax.random.normal(k, (fan_out, fan_in), jnp.float32) * std

    p = {}
    # Linear weights stored transposed (in, out): y = x @ W_T + bias
    p["W1e_T"] = xavier(ks[0], H, N).T
    p["W2e_T"] = xavier(ks[1], H, H).T
    p["W3e_T"] = xavier(ks[2], b, H).T
    p["W1d_T"] = xavier(ks[3], H, b).T
    p["W2d_T"] = xavier(ks[4], H, H).T
    p["W3d_T"] = xavier(ks[5], N, H).T

    zeros = lambda d: jnp.zeros((d,), jnp.float32)
    ones = lambda d: jnp.ones((d,), jnp.float32)
    p["b1e"], p["b2e"], p["b3e"] = zeros(H), zeros(H), zeros(b)
    p["g1e"], p["be1e"] = ones(H), zeros(H)
    p["g2e"], p["be2e"] = ones(H), zeros(H)
    p["b1d"], p["b2d"], p["b3d"] = zeros(H), zeros(H), zeros(N)
    p["g1d"], p["bd1"] = ones(H), zeros(H)
    p["g2d"], p["bd2"] = ones(H), zeros(H)

    # dynamics: gaussian_init_(b, std=1) -> N(0, (1/b)^2), orthogonalize via SVD
    wd0 = np.asarray(jax.random.normal(ks[6], (b, b), jnp.float32)) * (1.0 / b)
    U, _, Vh = np.linalg.svd(wd0)
    Wdyn = (U @ Vh) * init_scale                     # dynamics.weight
    Wback = np.linalg.pinv(Wdyn.T)                   # backdynamics.weight
    p["Wdyn_T"] = jnp.asarray(Wdyn.T, jnp.float32)   # q_next = q @ Wdyn_T
    p["Wback_T"] = jnp.asarray(Wback.T, jnp.float32)
    return p


# ----------------------------------------------------------------------------
# Wrapper (all packing + pallas_call under one jit)
# ----------------------------------------------------------------------------
def _round_up(x, k):
    return (x + k - 1) // k * k


def _pick_batch_block(b_pad, cap=1024):
    if b_pad <= 8:
        return b_pad
    # >= 2 grid tiles whenever the batch allows it so the "parallel" batch axis
    # spans both v7x TensorCores; on v5e/v6e the extra grid step is ~0.35us.
    return min(cap, _round_up(pl.cdiv(b_pad, 2), 8))


@partial(jax.jit, static_argnames=("steps", "steps_back", "mode"))
def _koopman_jit(x, params, steps, steps_back, mode):
    B = x.shape[0]
    m, n = x.shape[-2], x.shape[-1]
    N = m * n
    W1e_T = params["W1e_T"]
    H = W1e_T.shape[1]
    bdim = params["W1d_T"].shape[0]

    if mode == "forward":
        nsteps, W_T = steps, params["Wdyn_T"]
    else:
        nsteps, W_T = steps_back, params["Wback_T"]
    S1 = nsteps + 1
    SH, SMN = S1 * H, S1 * N

    # ---- wrapper-side packing (compiled with the kernel; overlaps input DMA) ---
    # Centering matrix: q @ C == q - mean_H(q) broadcast over the H features.
    C = jnp.eye(H, dtype=jnp.float32) - 1.0 / H

    # Folded dynamics + decoder fc1: block s = (W_T)^(s+1) @ W1d_T, last = W1d_T,
    # each post-multiplied by C so the kernel gets LN1-centered pre-activations.
    W1d_T = params["W1d_T"]
    blocks, P = [], W_T
    for _ in range(nsteps):
        blocks.append(jnp.dot(P, W1d_T, precision=_HP))
        P = jnp.dot(P, W_T, precision=_HP)
    blocks.append(W1d_T)
    A_wide_c = jnp.concatenate(
        [jnp.dot(blk, C, precision=_HP) for blk in blocks], axis=1)   # (b, SH)

    eyeS = jnp.eye(S1, dtype=jnp.float32)
    BD2 = jnp.kron(eyeS, jnp.dot(params["W2d_T"], C, precision=_HP))  # (SH, SH)
    MeanM = jnp.kron(eyeS, jnp.full((H, H), 1.0 / H, jnp.float32))    # (SH, SH)
    BD3 = jnp.kron(eyeS, params["W3d_T"])                             # (SH, SMN)
    Wdec = jnp.concatenate([BD2, MeanM, BD3], axis=1)

    Wenc = jnp.concatenate([params["W2e_T"], params["W3e_T"]], axis=1)  # (H, H+b)

    tile = lambda v: jnp.tile(v, S1)
    vecs = [
        params["b1e"], params["g1e"], params["be1e"],
        params["b2e"], params["g2e"], params["be2e"],
        params["b3e"],
        tile(jnp.dot(params["b1d"], C, precision=_HP)),
        tile(params["g1d"]), tile(params["bd1"]),
        tile(jnp.dot(params["b2d"], C, precision=_HP)),
        tile(params["g2d"]), tile(params["bd2"]),
        tile(params["b3d"]),
    ]
    VW = max(v.shape[0] for v in vecs)
    vec_pack = jnp.stack([jnp.pad(v, (0, VW - v.shape[0])) for v in vecs], axis=0)

    # ---- batch tiling: 8-aligned tiles, batch padded to ngrid * bb ----
    x_flat = x.reshape(B, N)
    bpad0 = _round_up(B, 8)
    bb = _pick_batch_block(bpad0)
    ngrid = pl.cdiv(bpad0, bb)
    Bpad = ngrid * bb
    if Bpad != B:
        x_flat = jnp.pad(x_flat, ((0, Bpad - B), (0, 0)))

    out_flat = pl.pallas_call(
        _kae_kernel,
        out_shape=jax.ShapeDtypeStruct((Bpad, SMN), jnp.float32),
        grid=(ngrid,),
        in_specs=[
            pl.BlockSpec((bb, N), lambda i: (i, 0)),
            pl.BlockSpec((N, H), lambda i: (0, 0)),
            pl.BlockSpec((H, H + bdim), lambda i: (0, 0)),
            pl.BlockSpec((bdim, SH), lambda i: (0, 0)),
            pl.BlockSpec((SH, 2 * SH + SMN), lambda i: (0, 0)),
            pl.BlockSpec((len(vecs), VW), lambda i: (0, 0)),
        ],
        out_specs=pl.BlockSpec((bb, SMN), lambda i: (i, 0)),
        compiler_params=pltpu.CompilerParams(
            dimension_semantics=("parallel",),
            vmem_limit_bytes=32 * 1024 * 1024),
    )(x_flat, W1e_T, Wenc, A_wide_c, Wdec, vec_pack)

    # One contiguous reshape to the PyTorch-style per-step list.
    out_r = out_flat[:B].reshape(B, S1, 1, m, n)
    return [out_r[:, s] for s in range(S1)]


def koopman_pallas(x, params, steps, steps_back, mode="forward"):
    outs = _koopman_jit(x, params, steps=steps, steps_back=steps_back, mode=mode)
    if mode == "forward":
        return outs, []
    return [], outs


# ----------------------------------------------------------------------------
# Pure-JAX reference (mirrors PyTorch forward exactly; correctness check only)
# ----------------------------------------------------------------------------
def koopman_reference(x, p, steps, steps_back, mode="forward"):
    def ln(h, g, beta):
        mu = h.mean(-1, keepdims=True)
        var = ((h - mu) ** 2).mean(-1, keepdims=True)
        return (h - mu) / jnp.sqrt(var + _EPS) * g + beta

    def encoder(xf):
        h = jnp.tanh(ln(jnp.dot(xf, p["W1e_T"], precision=_HP) + p["b1e"], p["g1e"], p["be1e"]))
        h = jnp.tanh(ln(jnp.dot(h, p["W2e_T"], precision=_HP) + p["b2e"], p["g2e"], p["be2e"]))
        return jnp.dot(h, p["W3e_T"], precision=_HP) + p["b3e"]

    def decoder(q):
        h = jnp.tanh(ln(jnp.dot(q, p["W1d_T"], precision=_HP) + p["b1d"], p["g1d"], p["bd1"]))
        h = jnp.tanh(ln(jnp.dot(h, p["W2d_T"], precision=_HP) + p["b2d"], p["g2d"], p["bd2"]))
        return jnp.dot(h, p["W3d_T"], precision=_HP) + p["b3d"]

    B, _, m, n = x.shape
    z = encoder(x.reshape(B, m * n))
    q = z
    out, out_back = [], []
    if mode == "forward":
        for _ in range(steps):
            q = jnp.dot(q, p["Wdyn_T"], precision=_HP)
            out.append(decoder(q).reshape(B, 1, m, n))
        out.append(decoder(z).reshape(B, 1, m, n))
        return out, out_back
    for _ in range(steps_back):
        q = jnp.dot(q, p["Wback_T"], precision=_HP)
        out_back.append(decoder(q).reshape(B, 1, m, n))
    out_back.append(decoder(z).reshape(B, 1, m, n))
    return out, out_back


# ----------------------------------------------------------------------------
if __name__ == "__main__":
    m, n, b = 8, 4, 16
    steps, steps_back, alpha, init_scale = 3, 3, 1, 1.0

    key = jax.random.PRNGKey(0)
    kx, kp, kx2 = jax.random.split(key, 3)
    params = init_params(kp, m, n, b, alpha=alpha, init_scale=init_scale)

    # small batch (pads 2 -> 8 rows, single grid tile), forward mode
    x = jax.random.normal(kx, (2, 1, m, n), jnp.float32)
    out_fwd, back_empty = koopman_pallas(x, params, steps, steps_back, mode="forward")
    out_fwd = [jax.block_until_ready(o) for o in out_fwd]
    assert back_empty == []
    ref_fwd, _ = koopman_reference(x, params, steps, steps_back, mode="forward")
    for o, r in zip(out_fwd, ref_fwd):
        np.testing.assert_allclose(np.asarray(o), np.asarray(r), rtol=1e-2, atol=1e-2)

    # backward mode
    fwd_empty, out_bwd = koopman_pallas(x, params, steps, steps_back, mode="backward")
    out_bwd = [jax.block_until_ready(o) for o in out_bwd]
    assert fwd_empty == []
    _, ref_bwd = koopman_reference(x, params, steps, steps_back, mode="backward")
    for o, r in zip(out_bwd, ref_bwd):
        np.testing.assert_allclose(np.asarray(o), np.asarray(r), rtol=1e-2, atol=1e-2)

    # non-multiple-of-8 batch -> exercises padding + the 2-tile "parallel" grid
    x2 = jax.random.normal(kx2, (20, 1, m, n), jnp.float32)
    out2, _ = koopman_pallas(x2, params, steps, steps_back, mode="forward")
    out2 = [jax.block_until_ready(o) for o in out2]
    ref2, _ = koopman_reference(x2, params, steps, steps_back, mode="forward")
    for o, r in zip(out2, ref2):
        np.testing.assert_allclose(np.asarray(o), np.asarray(r), rtol=1e-2, atol=1e-2)

    print("KERNEL_OK")
</pallas_src>

<mosaic_0001>
module attributes {stable_mosaic.version = 11 : i64} {
  func.func @_kae_kernel(%arg0: i32, %arg1: memref<8x32xf32, #tpu.memory_space<vmem>>, %arg2: memref<32x16xf32, #tpu.memory_space<vmem>>, %arg3: memref<16x32xf32, #tpu.memory_space<vmem>>, %arg4: memref<16x64xf32, #tpu.memory_space<vmem>>, %arg5: memref<64x256xf32, #tpu.memory_space<vmem>>, %arg6: memref<14x128xf32, #tpu.memory_space<vmem>>, %arg7: memref<8x128xf32, #tpu.memory_space<vmem>>) attributes {dimension_semantics = [#tpu.dimension_semantics<parallel>], iteration_bounds = array<i64: 1>, scalar_prefetch = 0 : i64, scratch_operands = 0 : i64, tpu.core_type = #tpu.core_type<tc>, window_params = [{transform_indices = @transform_0, window_bounds = array<i64: 8, 32>}, {pipeline_mode = #tpu.pipeline_mode<synchronous>, transform_indices = @transform_1, window_bounds = array<i64: 32, 16>}, {pipeline_mode = #tpu.pipeline_mode<synchronous>, transform_indices = @transform_2, window_bounds = array<i64: 16, 32>}, {pipeline_mode = #tpu.pipeline_mode<synchronous>, transform_indices = @transform_3, window_bounds = array<i64: 16, 64>}, {pipeline_mode = #tpu.pipeline_mode<synchronous>, transform_indices = @transform_4, window_bounds = array<i64: 64, 256>}, {pipeline_mode = #tpu.pipeline_mode<synchronous>, transform_indices = @transform_5, window_bounds = array<i64: 14, 128>}, {transform_indices = @transform_6, window_bounds = array<i64: 8, 128>}]} {
    %c0 = arith.constant 0 : index
    %c0_0 = arith.constant 0 : index
    %0 = vector.load %arg3[%c0, %c0_0] : memref<16x32xf32, #tpu.memory_space<vmem>>, vector<16x16xf32>
    %c0_1 = arith.constant 0 : index
    %c16 = arith.constant 16 : index
    %1 = vector.load %arg3[%c0_1, %c16] : memref<16x32xf32, #tpu.memory_space<vmem>>, vector<16x16xf32>
    %c0_2 = arith.constant 0 : index
    %c0_3 = arith.constant 0 : index
    %2 = vector.load %arg5[%c0_2, %c0_3] : memref<64x256xf32, #tpu.memory_space<vmem>>, vector<64x64xf32>
    %c0_4 = arith.constant 0 : index
    %c64 = arith.constant 64 : index
    %3 = vector.load %arg5[%c0_4, %c64] : memref<64x256xf32, #tpu.memory_space<vmem>>, vector<64x64xf32>
    %c0_5 = arith.constant 0 : index
    %c128 = arith.constant 128 : index
    %4 = vector.load %arg5[%c0_5, %c128] : memref<64x256xf32, #tpu.memory_space<vmem>>, vector<64x128xf32>
    %c0_6 = arith.constant 0 : index
    %c0_7 = arith.constant 0 : index
    %5 = vector.load %arg1[%c0_6, %c0_7] : memref<8x32xf32, #tpu.memory_space<vmem>>, vector<8x32xf32>
    %c0_8 = arith.constant 0 : index
    %c0_9 = arith.constant 0 : index
    %6 = vector.load %arg2[%c0_8, %c0_9] : memref<32x16xf32, #tpu.memory_space<vmem>>, vector<32x16xf32>
    %cst = arith.constant dense<0.000000e+00> : vector<8x16xf32>
    %7 = tpu.matmul %5, %6, %cst {dimension_numbers = #tpu.dot_dimension_numbers<[1], [0], [0], [1], [0, 0, 1, 1], [], []>} : vector<8x32xf32>, vector<32x16xf32>, vector<8x16xf32> -> vector<8x16xf32>
    %c0_10 = arith.constant 0 : index
    %c0_11 = arith.constant 0 : index
    %8 = vector.load %arg6[%c0_10, %c0_11] : memref<14x128xf32, #tpu.memory_space<vmem>>, vector<1x16xf32>
    %9 = vector.broadcast %8 : vector<1x16xf32> to vector<8x16xf32>
    %10 = arith.addf %7, %9 : vector<8x16xf32>
    %c1 = arith.constant 1 : index
    %c0_12 = arith.constant 0 : index
    %11 = vector.load %arg6[%c1, %c0_12] : memref<14x128xf32, #tpu.memory_space<vmem>>, vector<1x16xf32>
    %c2 = arith.constant 2 : index
    %c0_13 = arith.constant 0 : index
    %12 = vector.load %arg6[%c2, %c0_13] : memref<14x128xf32, #tpu.memory_space<vmem>>, vector<1x16xf32>
    %cst_14 = arith.constant dense<0.000000e+00> : vector<8xf32>
    %13 = vector.multi_reduction <add>, %10, %cst_14 [1] : vector<8x16xf32> to vector<8xf32>
    %14 = vector.shape_cast %13 : vector<8xf32> to vector<8x1xf32>
    %cst_15 = arith.constant 1.600000e+01 : f32
    %15 = vector.broadcast %cst_15 : f32 to vector<8x1xf32>
    %16 = arith.divf %14, %15 : vector<8x1xf32>
    %17 = vector.broadcast %16 : vector<8x1xf32> to vector<8x16xf32>
    %18 = arith.subf %10, %17 : vector<8x16xf32>
    %19 = arith.mulf %18, %18 : vector<8x16xf32>
    %cst_16 = arith.constant dense<0.000000e+00> : vector<8xf32>
    %20 = vector.multi_reduction <add>, %19, %cst_16 [1] : vector<8x16xf32> to vector<8xf32>
    %21 = vector.shape_cast %20 : vector<8xf32> to vector<8x1xf32>
    %cst_17 = arith.constant 1.600000e+01 : f32
    %22 = vector.broadcast %cst_17 : f32 to vector<8x1xf32>
    %23 = arith.divf %21, %22 : vector<8x1xf32>
    %24 = vector.broadcast %16 : vector<8x1xf32> to vector<8x16xf32>
    %25 = arith.subf %10, %24 : vector<8x16xf32>
    %cst_18 = arith.constant 9.99999974E-6 : f32
    %26 = vector.broadcast %cst_18 : f32 to vector<8x1xf32>
    %27 = arith.addf %23, %26 : vector<8x1xf32>
    %28 = math.rsqrt %27 : vector<8x1xf32>
    %29 = vector.broadcast %28 : vector<8x1xf32> to vector<8x16xf32>
    %30 = arith.mulf %25, %29 : vector<8x16xf32>
    %31 = vector.broadcast %11 : vector<1x16xf32> to vector<8x16xf32>
    %32 = arith.mulf %30, %31 : vector<8x16xf32>
    %33 = vector.broadcast %12 : vector<1x16xf32> to vector<8x16xf32>
    %34 = arith.addf %32, %33 : vector<8x16xf32>
    %35 = math.tanh %34 : vector<8x16xf32>
    %cst_19 = arith.constant dense<0.000000e+00> : vector<8x16xf32>
    %36 = tpu.matmul %35, %0, %cst_19 {dimension_numbers = #tpu.dot_dimension_numbers<[1], [0], [0], [1], [0, 0, 1, 1], [], []>} : vector<8x16xf32>, vector<16x16xf32>, vector<8x16xf32> -> vector<8x16xf32>
    %c3 = arith.constant 3 : index
    %c0_20 = arith.constant 0 : index
    %37 = vector.load %arg6[%c3, %c0_20] : memref<14x128xf32, #tpu.memory_space<vmem>>, vector<1x16xf32>
    %38 = vector.broadcast %37 : vector<1x16xf32> to vector<8x16xf32>
    %39 = arith.addf %36, %38 : vector<8x16xf32>
    %c4 = arith.constant 4 : index
    %c0_21 = arith.constant 0 : index
    %40 = vector.load %arg6[%c4, %c0_21] : memref<14x128xf32, #tpu.memory_space<vmem>>, vector<1x16xf32>
    %c5 = arith.constant 5 : index
    %c0_22 = arith.constant 0 : index
    %41 = vector.load %arg6[%c5, %c0_22] : memref<14x128xf32, #tpu.memory_space<vmem>>, vector<1x16xf32>
    %cst_23 = arith.constant dense<0.000000e+00> : vector<8xf32>
    %42 = vector.multi_reduction <add>, %39, %cst_23 [1] : vector<8x16xf32> to vector<8xf32>
    %43 = vector.shape_cast %42 : vector<8xf32> to vector<8x1xf32>
    %cst_24 = arith.constant 1.600000e+01 : f32
    %44 = vector.broadcast %cst_24 : f32 to vector<8x1xf32>
    %45 = arith.divf %43, %44 : vector<8x1xf32>
    %46 = vector.broadcast %45 : vector<8x1xf32> to vector<8x16xf32>
    %47 = arith.subf %39, %46 : vector<8x16xf32>
    %48 = arith.mulf %47, %47 : vector<8x16xf32>
    %cst_25 = arith.constant dense<0.000000e+00> : vector<8xf32>
    %49 = vector.multi_reduction <add>, %48, %cst_25 [1] : vector<8x16xf32> to vector<8xf32>
    %50 = vector.shape_cast %49 : vector<8xf32> to vector<8x1xf32>
    %cst_26 = arith.constant 1.600000e+01 : f32
    %51 = vector.broadcast %cst_26 : f32 to vector<8x1xf32>
    %52 = arith.divf %50, %51 : vector<8x1xf32>
    %53 = vector.broadcast %45 : vector<8x1xf32> to vector<8x16xf32>
    %54 = arith.subf %39, %53 : vector<8x16xf32>
    %cst_27 = arith.constant 9.99999974E-6 : f32
    %55 = vector.broadcast %cst_27 : f32 to vector<8x1xf32>
    %56 = arith.addf %52, %55 : vector<8x1xf32>
    %57 = math.rsqrt %56 : vector<8x1xf32>
    %58 = vector.broadcast %57 : vector<8x1xf32> to vector<8x16xf32>
    %59 = arith.mulf %54, %58 : vector<8x16xf32>
    %60 = vector.broadcast %40 : vector<1x16xf32> to vector<8x16xf32>
    %61 = arith.mulf %59, %60 : vector<8x16xf32>
    %62 = vector.broadcast %41 : vector<1x16xf32> to vector<8x16xf32>
    %63 = arith.addf %61, %62 : vector<8x16xf32>
    %64 = math.tanh %63 : vector<8x16xf32>
    %cst_28 = arith.constant dense<0.000000e+00> : vector<8x16xf32>
    %65 = tpu.matmul %64, %1, %cst_28 {dimension_numbers = #tpu.dot_dimension_numbers<[1], [0], [0], [1], [0, 0, 1, 1], [], []>} : vector<8x16xf32>, vector<16x16xf32>, vector<8x16xf32> -> vector<8x16xf32>
    %c6 = arith.constant 6 : index
    %c0_29 = arith.constant 0 : index
    %66 = vector.load %arg6[%c6, %c0_29] : memref<14x128xf32, #tpu.memory_space<vmem>>, vector<1x16xf32>
    %67 = vector.broadcast %66 : vector<1x16xf32> to vector<8x16xf32>
    %68 = arith.addf %65, %67 : vector<8x16xf32>
    %c0_30 = arith.constant 0 : index
    %c0_31 = arith.constant 0 : index
    %69 = vector.load %arg4[%c0_30, %c0_31] : memref<16x64xf32, #tpu.memory_space<vmem>>, vector<16x64xf32>
    %cst_32 = arith.constant dense<0.000000e+00> : vector<8x64xf32>
    %70 = tpu.matmul %68, %69, %cst_32 {dimension_numbers = #tpu.dot_dimension_numbers<[1], [0], [0], [1], [0, 0, 1, 1], [], []>} : vector<8x16xf32>, vector<16x64xf32>, vector<8x64xf32> -> vector<8x64xf32>
    %c7 = arith.constant 7 : index
    %c0_33 = arith.constant 0 : index
    %71 = vector.load %arg6[%c7, %c0_33] : memref<14x128xf32, #tpu.memory_space<vmem>>, vector<1x64xf32>
    %72 = vector.broadcast %71 : vector<1x64xf32> to vector<8x64xf32>
    %73 = arith.addf %70, %72 : vector<8x64xf32>
    %74 = arith.mulf %73, %73 : vector<8x64xf32>
    %cst_34 = arith.constant dense<0.000000e+00> : vector<8x64xf32>
    %75 = tpu.matmul %74, %3, %cst_34 {dimension_numbers = #tpu.dot_dimension_numbers<[1], [0], [0], [1], [0, 0, 1, 1], [], []>} : vector<8x64xf32>, vector<64x64xf32>, vector<8x64xf32> -> vector<8x64xf32>
    %cst_35 = arith.constant 9.99999974E-6 : f32
    %76 = vector.broadcast %cst_35 : f32 to vector<8x64xf32>
    %77 = arith.addf %75, %76 : vector<8x64xf32>
    %78 = math.rsqrt %77 : vector<8x64xf32>
    %79 = arith.mulf %73, %78 : vector<8x64xf32>
    %c8 = arith.constant 8 : index
    %c0_36 = arith.constant 0 : index
    %80 = vector.load %arg6[%c8, %c0_36] : memref<14x128xf32, #tpu.memory_space<vmem>>, vector<1x64xf32>
    %81 = vector.broadcast %80 : vector<1x64xf32> to vector<8x64xf32>
    %82 = arith.mulf %79, %81 : vector<8x64xf32>
    %c9 = arith.constant 9 : index
    %c0_37 = arith.constant 0 : index
    %83 = vector.load %arg6[%c9, %c0_37] : memref<14x128xf32, #tpu.memory_space<vmem>>, vector<1x64xf32>
    %84 = vector.broadcast %83 : vector<1x64xf32> to vector<8x64xf32>
    %85 = arith.addf %82, %84 : vector<8x64xf32>
    %86 = math.tanh %85 : vector<8x64xf32>
    %cst_38 = arith.constant dense<0.000000e+00> : vector<8x64xf32>
    %87 = tpu.matmul %86, %2, %cst_38 {dimension_numbers = #tpu.dot_dimension_numbers<[1], [0], [0], [1], [0, 0, 1, 1], [], []>} : vector<8x64xf32>, vector<64x64xf32>, vector<8x64xf32> -> vector<8x64xf32>
    %c10 = arith.constant 10 : index
    %c0_39 = arith.constant 0 : index
    %88 = vector.load %arg6[%c10, %c0_39] : memref<14x128xf32, #tpu.memory_space<vmem>>, vector<1x64xf32>
    %89 = vector.broadcast %88 : vector<1x64xf32> to vector<8x64xf32>
    %90 = arith.addf %87, %89 : vector<8x64xf32>
    %91 = arith.mulf %90, %90 : vector<8x64xf32>
    %cst_40 = arith.constant dense<0.000000e+00> : vector<8x64xf32>
    %92 = tpu.matmul %91, %3, %cst_40 {dimension_numbers = #tpu.dot_dimension_numbers<[1], [0], [0], [1], [0, 0, 1, 1], [], []>} : vector<8x64xf32>, vector<64x64xf32>, vector<8x64xf32> -> vector<8x64xf32>
    %cst_41 = arith.constant 9.99999974E-6 : f32
    %93 = vector.broadcast %cst_41 : f32 to vector<8x64xf32>
    %94 = arith.addf %92, %93 : vector<8x64xf32>
    %95 = math.rsqrt %94 : vector<8x64xf32>
    %96 = arith.mulf %90, %95 : vector<8x64xf32>
    %c11 = arith.constant 11 : index
    %c0_42 = arith.constant 0 : index
    %97 = vector.load %arg6[%c11, %c0_42] : memref<14x128xf32, #tpu.memory_space<vmem>>, vector<1x64xf32>
    %98 = vector.broadcast %97 : vector<1x64xf32> to vector<8x64xf32>
    %99 = arith.mulf %96, %98 : vector<8x64xf32>
    %c12 = arith.constant 12 : index
    %c0_43 = arith.constant 0 : index
    %100 = vector.load %arg6[%c12, %c0_43] : memref<14x128xf32, #tpu.memory_space<vmem>>, vector<1x64xf32>
    %101 = vector.broadcast %100 : vector<1x64xf32> to vector<8x64xf32>
    %102 = arith.addf %99, %101 : vector<8x64xf32>
    %103 = math.tanh %102 : vector<8x64xf32>
    %cst_44 = arith.constant dense<0.000000e+00> : vector<8x128xf32>
    %104 = tpu.matmul %103, %4, %cst_44 {dimension_numbers = #tpu.dot_dimension_numbers<[1], [0], [0], [1], [0, 0, 1, 1], [], []>} : vector<8x64xf32>, vector<64x128xf32>, vector<8x128xf32> -> vector<8x128xf32>
    %c13 = arith.constant 13 : index
    %c0_45 = arith.constant 0 : index
    %105 = vector.load %arg6[%c13, %c0_45] : memref<14x128xf32, #tpu.memory_space<vmem>>, vector<1x128xf32>
    %106 = vector.broadcast %105 : vector<1x128xf32> to vector<8x128xf32>
    %107 = arith.addf %104, %106 : vector<8x128xf32>
    %c0_46 = arith.constant 0 : index
    %c0_47 = arith.constant 0 : index
    %108 = vector.load %arg7[%c0_46, %c0_47] : memref<8x128xf32, #tpu.memory_space<vmem>>, vector<8x128xf32>
    tpu.vector_store %arg7[%c0_46, %c0_47], %107 {strides = array<i32>} : memref<8x128xf32, #tpu.memory_space<vmem>>, vector<8x128xf32>,
    return
  }
  func.func @transform_0(%arg0: i32) -> (i32, i32) {
    %c0_i32 = arith.constant 0 : i32
    %c0_i32_0 = arith.constant 0 : i32
    return %arg0, %c0_i32 : i32, i32
  }
  func.func @transform_1(%arg0: i32) -> (i32, i32) {
    %c0_i32 = arith.constant 0 : i32
    %c0_i32_0 = arith.constant 0 : i32
    %c0_i32_1 = arith.constant 0 : i32
    return %c0_i32, %c0_i32_0 : i32, i32
  }
  func.func @transform_2(%arg0: i32) -> (i32, i32) {
    %c0_i32 = arith.constant 0 : i32
    %c0_i32_0 = arith.constant 0 : i32
    %c0_i32_1 = arith.constant 0 : i32
    return %c0_i32, %c0_i32_0 : i32, i32
  }
  func.func @transform_3(%arg0: i32) -> (i32, i32) {
    %c0_i32 = arith.constant 0 : i32
    %c0_i32_0 = arith.constant 0 : i32
    %c0_i32_1 = arith.constant 0 : i32
    return %c0_i32, %c0_i32_0 : i32, i32
  }
  func.func @transform_4(%arg0: i32) -> (i32, i32) {
    %c0_i32 = arith.constant 0 : i32
    %c0_i32_0 = arith.constant 0 : i32
    %c0_i32_1 = arith.constant 0 : i32
    return %c0_i32, %c0_i32_0 : i32, i32
  }
  func.func @transform_5(%arg0: i32) -> (i32, i32) {
    %c0_i32 = arith.constant 0 : i32
    %c0_i32_0 = arith.constant 0 : i32
    %c0_i32_1 = arith.constant 0 : i32
    return %c0_i32, %c0_i32_0 : i32, i32
  }
  func.func @transform_6(%arg0: i32) -> (i32, i32) {
    %c0_i32 = arith.constant 0 : i32
    %c0_i32_0 = arith.constant 0 : i32
    return %arg0, %c0_i32 : i32, i32
  }
}

</mosaic_0001>

<bundles_post_ra>
// kernel: tile.53
= control target key start
LH: loop header
LB: loop body
LE: loop exit
PB: predicated region body
PF: predicated region fallthrough
CT: control target
= control target key end

     0   :  { %s22_s0 = inlined_call_operand.vmem [shape: f32[16], index: 0, kind: input, shape index: {}]   ;;  %s23_s1 = inlined_call_operand.vmem [shape: f32[4,16], index: 1, kind: output, shape index: {}]  }
   0x1   :  { %v4_v0 = vld [vmem:[%s22_s0] ss:$0 sm:$0xff] }
   0x2   :  { %5 = vst [vmem:[%s23_s1] sm:$0xf] %v4_v0 }

// kernel: tile.54
= control target key start
LH: loop header
LB: loop body
LE: loop exit
PB: predicated region body
PF: predicated region fallthrough
CT: control target
= control target key end

     0   :  { %vm8_vm0 = vcmask 130048   ;;  %s40_s8 = smov 16   ;;  %s41_s9 = smov 32   ;;  %vm14_vm1 = vcmask 523648   ;;  %vm20_vm2 = vcmask 392448   ;;  %vm26_vm3 = vcmask 261248   ;;  %s58_s0 = inlined_call_operand.vmem [shape: f32[4,16], index: 0, kind: input, shape index: {}]   ;;  %s59_s1 = inlined_call_operand.vmem [shape: f32[64], index: 1, kind: output, shape index: {}]  }
   0x1   :  { %v5_v0 = vld [vmem:[%s58_s0] sm:$0xf]  ;;  %s39_s0 = smov 48  }
   0x2   :  { %6 = vst [vmem:[#allocation1] sm:$0xf] %v5_v0 }
   0x9   :  { %v11_v1 = vld [vmem:[#allocation1 + $0x3] sm:$0x1]   ;;  %v23_v2 = vld [vmem:[#allocation1 + $0x1] sm:$0x1]   ;;  %v7_v3 = vld [vmem:[#allocation1] sm:$0x1]  }
   0xa   :  { %12 = vrot.lane.b32.xlu0 %v11_v1, %s39_s0  ;;  %24 = vrot.lane.b32.xlu1 %v23_v2, %s40_s8  ;;  %v17_v4 = vld [vmem:[#allocation1 + $0x2] sm:$0x1]   ;;  %9 = vst.msk [vmem:[#allocation0] sm:$0x1] %vm8_vm0, %v7_v3  }
   0xe   :  { %18 = vrot.lane.b32.xlu0 %v17_v4, %s41_s9 }
  0x7c   :  { %v13_v5 = vpop.permute.xlu0 %12   ;;  %v25_v6 = vpop.permute.xlu1 %24  }
  0x7d   :  { %15 = vst.msk [vmem:[#allocation0] sm:$0x1] %vm14_vm1, %v13_v5  }
  0x80   :  { %v19_v7 = vpop.permute.xlu0 %18  }
  0x81   :  { %21 = vst.msk [vmem:[#allocation0] sm:$0x1] %vm20_vm2, %v19_v7  }
  0x82   :  { %27 = vst.msk [vmem:[#allocation0] sm:$0x1] %vm26_vm3, %v25_v6  }
  0x89   :  { %v32_v8 = vld [vmem:[#allocation0] sm:$0x1] }
  0x8a   :  { %35 = vst [vmem:[%s59_s1] sm:$0x1] %v32_v8 }

// kernel: tile.68
= control target key start
LH: loop header
LB: loop body
LE: loop exit
PB: predicated region body
PF: predicated region fallthrough
CT: control target
= control target key end

     0   :  { %s22_s0 = inlined_call_operand.vmem [shape: f32[32], index: 0, kind: input, shape index: {}]   ;;  %s23_s1 = inlined_call_operand.vmem [shape: f32[4,32], index: 1, kind: output, shape index: {}]  }
   0x1   :  { %v4_v0 = vld [vmem:[%s22_s0] ss:$0 sm:$0xff] }
   0x2   :  { %5 = vst [vmem:[%s23_s1] sm:$0xf] %v4_v0 }

// kernel: _koopman_jit.1
= control target key start
LH: loop header
LB: loop body
LE: loop exit
PB: predicated region body
PF: predicated region fallthrough
CT: control target
= control target key end

     0   :  { %v995_v0 = vmov 0.0   ;;  %vm996_vm0 = vmmov 0   ;;  %vm51_vm1 = vcmask 261120   ;;  %vm127_vm2 = vcmask 130048   ;;  %s997_s16 = smov 112   ;;  %s998_s29 = smov 64   ;;  %s1223_s1 = inlined_call_operand.vmem [shape: f32[32,16], index: 1, kind: input, shape index: {}]   ;;  %s1224_s0 = inlined_call_operand.vmem [shape: f32[8,32], index: 0, kind: input, shape index: {}]   ;;  %s1225_s5 = inlined_call_operand.vmem [shape: f32[14,128], index: 5, kind: input, shape index: {}]   ;;  %s1226_s2 = inlined_call_operand.vmem [shape: f32[16,32], index: 2, kind: input, shape index: {}]   ;;  %s1227_s3 = inlined_call_operand.vmem [shape: f32[16,64], index: 3, kind: input, shape index: {}]   ;;  %s1228_s4 = inlined_call_operand.vmem [shape: f32[64,256], index: 4, kind: input, shape index: {}]   ;;  %s1229_s6 = inlined_call_operand.vmem [shape: f32[8,128], index: 6, kind: output, shape index: {}]  }
   0x1   :  { %867 = vmatprep.subr.mxu0 %v995_v0  ;;  %v45_v1 = vld [vmem:[%s1223_s1 + $0x18] sm:$0xff]  ;;  %v44_v2 = vld [vmem:[%s1223_s1 + $0x10] sm:$0xff]  ;;  %875 = vmatprep.mubr.msk.f32.mxu0 %vm996_vm0, %v995_v0  ;;  %v43_v3 = vld [vmem:[%s1223_s1 + $0x8] sm:$0xff]  ;;  %vm456_vm3 = vcmask 523264  }
   0x2   :  { %868 = vmatpush3.msra.mxu0 %v45_v1  ;;  %878 = vmatprep.subr.mxu1 %v995_v0  ;;  %v42_v4 = vld [vmem:[%s1223_s1] sm:$0xff]  ;;  %v24_v16 = vld [vmem:[%s1226_s2 + $0x8] sm:$0xff]  ;;  %v32_v52 = vld [vmem:[%s1228_s4 + $0x70] sm:$0xff] }
   0x3   :  { %869 = vmatprep.subr.mxu0 %v995_v0  ;;  %882 = vmatprep.mubr.msk.f32.mxu1 %vm996_vm0, %v995_v0  ;;  %v41_v5 = vld [vmem:[%s1224_s0] sm:$0xff]  ;;  %v344_v39 = vld [vmem:[%s1227_s3 + $0x8] sm:$0xff]  ;;  %v30_v53 = vld [vmem:[%s1228_s4 + $0x50] sm:$0xff] }
   0x4   :  { %870 = vmatpush3.msra.mxu0 %v44_v2  ;;  %v795_v6 = vld [vmem:[%s1225_s5] ss:$0 sm:$0xff]  ;;  %879 = vmatpush3.msra.mxu1 %v24_v16  ;;  %v797_v22 = vld [vmem:[%s1225_s5 + $0x1] ss:$0 sm:$0xff]  ;;  %v798_v24 = vld [vmem:[%s1225_s5 + $0x2] ss:$0 sm:$0xff] }
   0x5   :  { %871 = vmatprep.subr.mxu0 %v995_v0  ;;  %v23_v17 = vld [vmem:[%s1226_s2] sm:$0xff]  ;;  %880 = vmatprep.subr.mxu1 %v995_v0  ;;  %v28_v55 = vld [vmem:[%s1228_s4 + $0x30] sm:$0xff] }
   0x6   :  { %872 = vmatpush3.msra.mxu0 %v43_v3  ;;  %881 = vmatpush3.msra.mxu1 %v23_v17  ;;  %v799_v28 = vld [vmem:[%s1225_s5 + $0x3] ss:$0 sm:$0xff]  ;;  %v801_v45 = vld [vmem:[%s1225_s5 + $0x4] ss:$0 sm:$0xff]  ;;  %v802_v47 = vld [vmem:[%s1225_s5 + $0x5] ss:$0 sm:$0xff] }
   0x7   :  { %873 = vmatprep.subr.mxu0 %v995_v0  ;;  %885 = vmatprep.subr.mxu1 %v995_v0  ;;  %v343_v51 = vld [vmem:[%s1227_s3] sm:$0xff]  ;;  %v26_v57 = vld [vmem:[%s1228_s4 + $0x10] sm:$0xff] }
   0x8   :  { %874 = vmatpush3.msra.mxu0 %v42_v4  ;;  %v31_v54 = vld [vmem:[%s1228_s4 + $0x60] sm:$0xff] }
   0x9   :  { %876 = vmatmul.mubr.msk.f32.vlgmr.msra.gmra.mxu0 %vm51_vm1, %v41_v5  ;;  %892 = vmatprep.subr.mxu0 %v995_v0  ;;  %v29_v56 = vld [vmem:[%s1228_s4 + $0x40] sm:$0xff] }
   0xa   :  { %896 = vmatprep.mubr.msk.f32.mxu0 %vm996_vm0, %v995_v0  ;;  %893 = vmatpush3.msra.mxu0 %v344_v39  ;;  %v27_v58 = vld [vmem:[%s1228_s4 + $0x20] sm:$0xff] }
   0xb   :  { %894 = vmatprep.subr.mxu0 %v995_v0  ;;  %v25_v59 = vld [vmem:[%s1228_s4] sm:$0xff] }
   0xc   :  { %895 = vmatpush3.msra.mxu0 %v343_v51  ;;  %v803_v1 = vld [vmem:[%s1225_s5 + $0x6] ss:$0 sm:$0xff] }
   0xd   :  { %918 = vmatprep.subr.mxu0 %v995_v0 }
  0xc9   :  { %v121_v7 = vpop.f32.mrf.mxu0 }
  0xca   :  { %v122_v8 = vadd.f32 %v795_v6, %v121_v7 }
  0xcb   :  { %v877_v9 = vpop.f32.mrf.mxu0 }
  0xcc   :  { %v128_v10 = vsel %vm127_vm2, %v122_v8, 0.0  ;;  %v805_v9 = vld [vmem:[%s1225_s5 + $0x7] ss:$0 sm:$0xff] }
  0xcd   :  { %129 = vadd.xlane.f32.xlu0 %v128_v10 }
 0x156   :  { %v130_v11 = vpop.xlane.xlu0 %129 }
 0x157   :  { %v132_v12 = vmul.f32 0.0625, %v130_v11 }
 0x159   :  { %v133_v13 = vsub.f32 %v122_v8, %v132_v12 }
 0x15b   :  { %v134_v14 = vmul.f32 %v133_v13, %v133_v13 }
 0x15d   :  { %v135_v15 = vsel %vm127_vm2, %v134_v14, 0.0 }
 0x15e   :  { %136 = vadd.xlane.f32.xlu0 %v135_v15 }
 0x174   :  { %266 = vrot.lane.b32.xlu0 %v24_v16, %s997_s16 }
 0x178   :  { %442 = vrot.lane.b32.xlu0 %v30_v53, %s998_s29 }
 0x17c   :  { %438 = vrot.lane.b32.xlu0 %v28_v55, %s998_s29 }
 0x180   :  { %434 = vrot.lane.b32.xlu0 %v26_v57, %s998_s29 }
 0x1e7   :  { %v137_v18 = vpop.xlane.xlu0 %136 }
 0x1e8   :  { %v138_v19 = vmul.f32 0.0625, %v137_v18  ;;  %v808_v18 = vld [vmem:[%s1225_s5 + $0x8] ss:$0 sm:$0xff] }
 0x1ea   :  { %v139_v20 = vadd.f32 1e-05, %v138_v19 }
 0x1eb   :  { %v267_v38 = vpop.permute.xlu0 %266 }
 0x1ec   :  { %979 = vrsqrt.f32 %v139_v20  ;;  %v809_v20 = vld [vmem:[%s1225_s5 + $0x9] ss:$0 sm:$0xff] }
 0x1ef   :  { %v443_v61 = vpop.permute.xlu0 %442 }
 0x1f3   :  { %v439_v63 = vpop.permute.xlu0 %438 }
 0x1f7   :  { %v435_v7 = vpop.permute.xlu0 %434 }
 0x1f9   :  { %v980_v21 = vpop.eup %979 }
 0x1fa   :  { %v141_v23 = vmul.f32 %v980_v21, %v133_v13 }
 0x1fc   :  { %v146_v25 = vmul.f32 %v797_v22, %v141_v23 }
 0x1fe   :  { %v151_v26 = vadd.f32 %v798_v24, %v146_v25  ;;  %v810_v24 = vld [vmem:[%s1225_s5 + $0xa] ss:$0 sm:$0xff] }
 0x200   :  { %981 = vtanh.f32 %v151_v26 }
 0x20d   :  { %v982_v27 = vpop.eup %981 }
 0x20e   :  { %883 = vmatmul.mubr.msk.f32.vlgmr.msra.gmra.mxu1 %vm127_vm2, %v982_v27 }
 0x20f   :  { %889 = vmatprep.mubr.msk.f32.mxu1 %vm996_vm0, %v995_v0  ;;  %886 = vmatpush3.msra.mxu1 %v267_v38 }
 0x210   :  { %887 = vmatprep.subr.mxu1 %v995_v0 }
 0x2ce   :  { %v227_v29 = vpop.f32.mrf.mxu1 }
 0x2cf   :  { %v228_v30 = vadd.f32 %v799_v28, %v227_v29  ;;  %v40_v29 = vld [vmem:[%s1228_s4 + $0x78] sm:$0xff] }
 0x2d0   :  { %v884_v31 = vpop.f32.mrf.mxu1 }
 0x2d1   :  { %v233_v32 = vsel %vm127_vm2, %v228_v30, 0.0  ;;  %v38_v31 = vld [vmem:[%s1228_s4 + $0x58] sm:$0xff] }
 0x2d2   :  { %234 = vadd.xlane.f32.xlu1 %v233_v32  ;;  %v37_v32 = vld [vmem:[%s1228_s4 + $0x48] sm:$0xff] }
 0x35b   :  { %v235_v33 = vpop.xlane.xlu1 %234 }
 0x35c   :  { %v236_v34 = vmul.f32 0.0625, %v235_v33  ;;  %v36_v33 = vld [vmem:[%s1228_s4 + $0x38] sm:$0xff] }
 0x35e   :  { %v237_v35 = vsub.f32 %v228_v30, %v236_v34  ;;  %v39_v30 = vld [vmem:[%s1228_s4 + $0x68] sm:$0xff] }
 0x35f   :  { %v35_v34 = vld [vmem:[%s1228_s4 + $0x28] sm:$0xff] }
 0x360   :  { %v238_v36 = vmul.f32 %v237_v35, %v237_v35 }
 0x362   :  { %v239_v37 = vsel %vm127_vm2, %v238_v36, 0.0  ;;  %v33_v36 = vld [vmem:[%s1228_s4 + $0x8] sm:$0xff] }
 0x363   :  { %240 = vadd.xlane.f32.xlu1 %v239_v37 }
 0x374   :  { %264 = vrot.lane.b32.xlu1 %v23_v17, %s997_s16 }
 0x378   :  { %446 = vrot.lane.b32.xlu1 %v32_v52, %s998_s29 }
 0x37c   :  { %444 = vrot.lane.b32.xlu1 %v31_v54, %s998_s29 }
 0x380   :  { %440 = vrot.lane.b32.xlu1 %v29_v56, %s998_s29 }
 0x384   :  { %436 = vrot.lane.b32.xlu1 %v27_v58, %s998_s29 }
 0x388   :  { %432 = vrot.lane.b32.xlu1 %v25_v59, %s998_s29 }
 0x3ec   :  { %v241_v40 = vpop.xlane.xlu1 %240 }
 0x3ed   :  { %v242_v41 = vmul.f32 0.0625, %v241_v40 }
 0x3ef   :  { %v243_v42 = vadd.f32 1e-05, %v242_v41  ;;  %v813_v41 = vld [vmem:[%s1225_s5 + $0xb] ss:$0 sm:$0xff] }
 0x3f0   :  { %v265_v43 = vpop.permute.xlu1 %264 }
 0x3f1   :  { %983 = vrsqrt.f32 %v243_v42  ;;  %888 = vmatpush3.msra.mxu1 %v265_v43  ;;  %v814_v43 = vld [vmem:[%s1225_s5 + $0xc] ss:$0 sm:$0xff] }
 0x3f2   :  { %899 = vmatprep.subr.mxu1 %v995_v0 }
 0x3f4   :  { %v447_v60 = vpop.permute.xlu1 %446 }
 0x3f8   :  { %v445_v62 = vpop.permute.xlu1 %444 }
 0x3fc   :  { %v441_v2 = vpop.permute.xlu1 %440 }
 0x3fe   :  { %v984_v44 = vpop.eup %983 }
 0x3ff   :  { %v245_v46 = vmul.f32 %v984_v44, %v237_v35  ;;  %v34_v35 = vld [vmem:[%s1228_s4 + $0x18] sm:$0xff] }
 0x400   :  { %v437_v6 = vpop.permute.xlu1 %436 }
 0x401   :  { %v250_v48 = vmul.f32 %v801_v45, %v245_v46 }
 0x403   :  { %v255_v49 = vadd.f32 %v802_v47, %v250_v48 }
 0x404   :  { %v433_v8 = vpop.permute.xlu1 %432 }
 0x405   :  { %985 = vtanh.f32 %v255_v49 }
 0x412   :  { %v986_v50 = vpop.eup %985 }
 0x413   :  { %890 = vmatmul.mubr.msk.f32.vlgmr.msra.gmra.mxu1 %vm127_vm2, %v986_v50 }
 0x414   :  { %915 = vmatprep.mubr.msk.f32.mxu1 %vm996_vm0, %v995_v0  ;;  %900 = vmatpush3.msra.mxu1 %v447_v60 }
 0x415   :  { %901 = vmatprep.subr.mxu1 %v995_v0 }
 0x416   :  { %902 = vmatpush3.msra.mxu1 %v445_v62 }
 0x417   :  { %903 = vmatprep.subr.mxu1 %v995_v0 }
 0x418   :  { %904 = vmatpush3.msra.mxu1 %v443_v61 }
 0x419   :  { %905 = vmatprep.subr.mxu1 %v995_v0 }
 0x41a   :  { %906 = vmatpush3.msra.mxu1 %v441_v2 }
 0x41b   :  { %907 = vmatprep.subr.mxu1 %v995_v0 }
 0x41c   :  { %908 = vmatpush3.msra.mxu1 %v439_v63 }
 0x41d   :  { %909 = vmatprep.subr.mxu1 %v995_v0 }
 0x41e   :  { %910 = vmatpush3.msra.mxu1 %v437_v6 }
 0x41f   :  { %911 = vmatprep.subr.mxu1 %v995_v0 }
 0x420   :  { %912 = vmatpush3.msra.mxu1 %v435_v7 }
 0x421   :  { %913 = vmatprep.subr.mxu1 %v995_v0 }
 0x422   :  { %914 = vmatpush3.msra.mxu1 %v433_v8 }
 0x423   :  { %937 = vmatprep.subr.mxu1 %v995_v0 }
 0x4d3   :  { %v339_v3 = vpop.f32.mrf.mxu1 }
 0x4d4   :  { %v340_v4 = vadd.f32 %v803_v1, %v339_v3 }
 0x4d5   :  { %v891_v5 = vpop.f32.mrf.mxu1 }
 0x4d6   :  { %897 = vmatmul.mubr.msk.f32.vlgmr.msra.gmra.mxu0 %vm127_vm2, %v340_v4 }
 0x4d7   :  { %919 = vmatpush3.msra.mxu0 %v32_v52  ;;  %934 = vmatprep.mubr.msk.f32.mxu0 %vm996_vm0, %v995_v0 }
 0x4d8   :  { %920 = vmatprep.subr.mxu0 %v995_v0 }
 0x4d9   :  { %921 = vmatpush3.msra.mxu0 %v31_v54 }
 0x4da   :  { %922 = vmatprep.subr.mxu0 %v995_v0 }
 0x4db   :  { %923 = vmatpush3.msra.mxu0 %v30_v53 }
 0x4dc   :  { %924 = vmatprep.subr.mxu0 %v995_v0 }
 0x4dd   :  { %925 = vmatpush3.msra.mxu0 %v29_v56 }
 0x4de   :  { %926 = vmatprep.subr.mxu0 %v995_v0 }
 0x4df   :  { %927 = vmatpush3.msra.mxu0 %v28_v55 }
 0x4e0   :  { %928 = vmatprep.subr.mxu0 %v995_v0 }
 0x4e1   :  { %929 = vmatpush3.msra.mxu0 %v27_v58 }
 0x4e2   :  { %930 = vmatprep.subr.mxu0 %v995_v0 }
 0x4e3   :  { %931 = vmatpush3.msra.mxu0 %v26_v57 }
 0x4e4   :  { %932 = vmatprep.subr.mxu0 %v995_v0 }
 0x4e5   :  { %933 = vmatpush3.msra.mxu0 %v25_v59 }
 0x4e6   :  { %956 = vmatprep.subr.mxu0 %v995_v0 }
 0x596   :  { %v419_v10 = vpop.f32.mrf.mxu0 }
 0x597   :  { %v420_v11 = vadd.f32 %v805_v9, %v419_v10 }
 0x598   :  { %v898_v12 = vpop.f32.mrf.mxu0 }
 0x599   :  { %v423_v13 = vmul.f32 %v420_v11, %v420_v11 }
 0x59b   :  { %916 = vmatmul.mubr.msk.f32.vlgmr.msra.gmra.mxu1 %vm456_vm3, %v423_v13 }
 0x59c   :  { %938 = vmatpush3.msra.mxu1 %v447_v60  ;;  %953 = vmatprep.mubr.msk.f32.mxu1 %vm996_vm0, %v995_v0 }
 0x59d   :  { %939 = vmatprep.subr.mxu1 %v995_v0 }
 0x59e   :  { %940 = vmatpush3.msra.mxu1 %v445_v62 }
 0x59f   :  { %941 = vmatprep.subr.mxu1 %v995_v0 }
 0x5a0   :  { %942 = vmatpush3.msra.mxu1 %v443_v61 }
 0x5a1   :  { %943 = vmatprep.subr.mxu1 %v995_v0 }
 0x5a2   :  { %944 = vmatpush3.msra.mxu1 %v441_v2 }
 0x5a3   :  { %945 = vmatprep.subr.mxu1 %v995_v0 }
 0x5a4   :  { %946 = vmatpush3.msra.mxu1 %v439_v63 }
 0x5a5   :  { %947 = vmatprep.subr.mxu1 %v995_v0 }
 0x5a6   :  { %948 = vmatpush3.msra.mxu1 %v437_v6 }
 0x5a7   :  { %949 = vmatprep.subr.mxu1 %v995_v0 }
 0x5a8   :  { %950 = vmatpush3.msra.mxu1 %v435_v7 }
 0x5a9   :  { %951 = vmatprep.subr.mxu1 %v995_v0 }
 0x5aa   :  { %952 = vmatpush3.msra.mxu1 %v433_v8 }
 0x65b   :  { %v526_v14 = vpop.f32.mrf.mxu1 }
 0x65c   :  { %v527_v15 = vadd.f32 1e-05, %v526_v14 }
 0x65d   :  { %v917_v16 = vpop.f32.mrf.mxu1 }
 0x65e   :  { %987 = vrsqrt.f32 %v527_v15 }
 0x66b   :  { %v988_v17 = vpop.eup %987 }
 0x66c   :  { %v531_v19 = vmul.f32 %v988_v17, %v420_v11 }
 0x66e   :  { %v537_v21 = vmul.f32 %v808_v18, %v531_v19 }
 0x670   :  { %v543_v22 = vadd.f32 %v809_v20, %v537_v21 }
 0x672   :  { %989 = vtanh.f32 %v543_v22 }
 0x67f   :  { %v990_v23 = vpop.eup %989 }
 0x680   :  { %935 = vmatmul.mubr.msk.f32.vlgmr.msra.gmra.mxu0 %vm456_vm3, %v990_v23 }
 0x681   :  { %972 = vmatprep.mubr.msk.f32.mxu0 %vm996_vm0, %v995_v0  ;;  %957 = vmatpush3.msra.mxu0 %v40_v29 }
 0x682   :  { %958 = vmatprep.subr.mxu0 %v995_v0 }
 0x683   :  { %959 = vmatpush3.msra.mxu0 %v39_v30 }
 0x684   :  { %960 = vmatprep.subr.mxu0 %v995_v0 }
 0x685   :  { %961 = vmatpush3.msra.mxu0 %v38_v31 }
 0x686   :  { %962 = vmatprep.subr.mxu0 %v995_v0 }
 0x687   :  { %963 = vmatpush3.msra.mxu0 %v37_v32 }
 0x688   :  { %964 = vmatprep.subr.mxu0 %v995_v0 }
 0x689   :  { %965 = vmatpush3.msra.mxu0 %v36_v33 }
 0x68a   :  { %966 = vmatprep.subr.mxu0 %v995_v0 }
 0x68b   :  { %967 = vmatpush3.msra.mxu0 %v35_v34 }
 0x68c   :  { %968 = vmatprep.subr.mxu0 %v995_v0 }
 0x68d   :  { %969 = vmatpush3.msra.mxu0 %v34_v35 }
 0x68e   :  { %970 = vmatprep.subr.mxu0 %v995_v0  ;;  %v815_v0 = vld [vmem:[%s1225_s5 + $0xd] ss:$0 sm:$0xff] }
 0x68f   :  { %971 = vmatpush3.msra.mxu0 %v33_v36 }
 0x740   :  { %v619_v25 = vpop.f32.mrf.mxu0 }
 0x741   :  { %v620_v26 = vadd.f32 %v810_v24, %v619_v25 }
 0x742   :  { %v936_v27 = vpop.f32.mrf.mxu0 }
 0x743   :  { %v623_v28 = vmul.f32 %v620_v26, %v620_v26 }
 0x745   :  { %954 = vmatmul.mubr.msk.f32.vlgmr.msra.gmra.mxu1 %vm456_vm3, %v623_v28 }
 0x805   :  { %v693_v37 = vpop.f32.mrf.mxu1 }
 0x806   :  { %v694_v38 = vadd.f32 1e-05, %v693_v37 }
 0x807   :  { %v955_v39 = vpop.f32.mrf.mxu1 }
 0x808   :  { %991 = vrsqrt.f32 %v694_v38 }
 0x815   :  { %v992_v40 = vpop.eup %991 }
 0x816   :  { %v698_v42 = vmul.f32 %v992_v40, %v620_v26 }
 0x818   :  { %v704_v44 = vmul.f32 %v813_v41, %v698_v42 }
 0x81a   :  { %v710_v45 = vadd.f32 %v814_v43, %v704_v44 }
 0x81c   :  { %993 = vtanh.f32 %v710_v45 }
 0x829   :  { %v994_v46 = vpop.eup %993 }
 0x82a   :  { %973 = vmatmul.mubr.msk.f32.vlgmr.msra.gmra.mxu0 %vm456_vm3, %v994_v46 }
 0x8ea   :  { %v786_v47 = vpop.f32.mrf.mxu0 }
 0x8eb   :  { %v787_v48 = vadd.f32 %v815_v0, %v786_v47 }
 0x8ec   :  { %v974_v49 = vpop.f32.mrf.mxu0 }
 0x8ed   :  { %790 = vst [vmem:[%s1229_s6] sm:$0xff] %v787_v48 }

</bundles_post_ra>
